<compile_context>
chip_gen: v7x
topology: tpu7x:2x2x1
jax: 0.10.0
libtpu: 0.0.40
codegen_flags: <defaults>
</compile_context>

<pallas_src>
from functools import partial

import jax
import jax.numpy as jnp
from jax.experimental import pallas as pl
from jax.experimental.pallas import tpu as pltpu


# ----------------------------------------------------------------------------
# Kernels
# ----------------------------------------------------------------------------
def _kernel_lane_major(inv_std, t_ref, e_ref, centers_ref, w0t_ref, w1t_ref,
                       b0_ref, b1_ref, out_ref):
    # t_ref/e_ref: (1, TB)   centers_ref: (n_bins, 1) pre-scaled by 1/std
    # w0t/w1t:     (emb_dim, n_bins)   b0/b1: (emb_dim, 1)
    # out_ref:     (emb_dim, TB)  -- batch on lanes, lane-dense stores.
    t = t_ref[...]                                   # (1, TB)
    is_event = e_ref[...] != 0.0                     # (1, TB)  (torch .bool())

    z = t * inv_std - centers_ref[...]               # (n_bins, TB)
    enc = jnp.exp(-(z * z))                          # (n_bins, TB)  (EUP)

    y0 = jnp.dot(w0t_ref[...], enc, preferred_element_type=jnp.float32)
    y1 = jnp.dot(w1t_ref[...], enc, preferred_element_type=jnp.float32)

    out_ref[...] = jnp.where(is_event, y1 + b1_ref[...], y0 + b0_ref[...])


def _kernel_batch_major(inv_std, t_ref, e_ref, centers_ref, w0_ref, w1_ref,
                        b0_ref, b1_ref, out_ref):
    # t_ref/e_ref: (TB, 1)   centers_ref: (1, n_bins) pre-scaled by 1/std
    # w0/w1:       (n_bins, emb_dim)   b0/b1: (1, emb_dim)
    # out_ref:     (TB, emb_dim) -- emb_dim (multiple of 128) on lanes.
    t = t_ref[...]                                   # (TB, 1)
    is_event = e_ref[...] != 0.0                     # (TB, 1)

    z = t * inv_std - centers_ref[...]               # (TB, n_bins)
    enc = jnp.exp(-(z * z))                          # (TB, n_bins)

    y0 = jnp.dot(enc, w0_ref[...], preferred_element_type=jnp.float32)
    y1 = jnp.dot(enc, w1_ref[...], preferred_element_type=jnp.float32)

    out_ref[...] = jnp.where(is_event, y1 + b1_ref[...], y0 + b0_ref[...])


# ----------------------------------------------------------------------------
# Tiling
# ----------------------------------------------------------------------------
def _choose_batch_tile(B, emb_dim, n_bins, *, target_out_tile_bytes=2 << 20,
                       vmem_budget_bytes=20 << 20):
    """Batch-tile (multiple of 128) sized for ~2 MiB output tiles, capped by a
    conservative VMEM working-set budget and by a >=2-step grid (v7x 2 TCs)."""
    def _align(x):
        return max(128, (int(x) // 128) * 128)

    tb = _align(target_out_tile_bytes // (4 * emb_dim))

    # Per-batch-column VMEM bytes (conservative): double-buffered out tile
    # + double-buffered time/event tiles + in-kernel temporaries
    # (z/enc ~ 2*n_bins, y0/y1/select ~ 4*emb_dim).
    per_col = 4 * (2 * emb_dim + 4 + 2 * n_bins + 4 * emb_dim)
    tb = min(tb, _align(vmem_budget_bytes // per_col))

    b_ceil = pl.cdiv(B, 128) * 128
    tb = min(tb, b_ceil)
    if b_ceil >= 2 * 128:
        # keep at least two grid steps so the "parallel" axis can shard across
        # v7x's two TensorCores.
        tb = min(tb, pl.cdiv(B, 2 * 128) * 128)
    return tb


# ----------------------------------------------------------------------------
# Wrapper
# ----------------------------------------------------------------------------
def embed_surv_rbf_2heads(time, event, params, *, v_min, v_max, n_bins):
    """time, event: (B, 1) float32.  Returns (B, 1, emb_dim) float32."""
    time = jnp.squeeze(time, axis=1).astype(jnp.float32)    # (B,)
    event = jnp.squeeze(event, axis=1).astype(jnp.float32)  # (B,)
    B = time.shape[0]
    emb_dim = params["w0"].shape[1]

    rbf_std = (v_max - v_min) / n_bins
    inv_std = 1.0 / rbf_std
    centers = jnp.linspace(v_min, v_max, n_bins, dtype=jnp.float32) * inv_std

    tb = _choose_batch_tile(B, emb_dim, n_bins)
    b_pad = pl.cdiv(B, tb) * tb
    grid = (b_pad // tb,)
    pad = b_pad - B

    cost = pl.CostEstimate(
        flops=int(2 * (2 * n_bins) * emb_dim * b_pad),
        transcendentals=int(n_bins * b_pad),
        bytes_accessed=int(4 * (2 * b_pad + emb_dim * b_pad
                                + 2 * n_bins * emb_dim + n_bins + 2 * emb_dim)),
    )
    cparams = pltpu.CompilerParams(
        dimension_semantics=("parallel",),
        vmem_limit_bytes=32 << 20,
    )

    if emb_dim % 128 == 0:
        # ------ batch-major path: lane-dense on emb_dim, NO wrapper transpose.
        t_col = jnp.pad(time, (0, pad)).reshape(b_pad, 1)
        e_col = jnp.pad(event, (0, pad)).reshape(b_pad, 1)
        out = pl.pallas_call(
            partial(_kernel_batch_major, inv_std),
            out_shape=jax.ShapeDtypeStruct((b_pad, emb_dim), jnp.float32),
            grid=grid,
            in_specs=[
                pl.BlockSpec((tb, 1), lambda i: (i, 0)),               # time
                pl.BlockSpec((tb, 1), lambda i: (i, 0)),               # event
                pl.BlockSpec((1, n_bins), lambda i: (0, 0)),           # centers
                pl.BlockSpec((n_bins, emb_dim), lambda i: (0, 0)),     # w0
                pl.BlockSpec((n_bins, emb_dim), lambda i: (0, 0)),     # w1
                pl.BlockSpec((1, emb_dim), lambda i: (0, 0)),          # b0
                pl.BlockSpec((1, emb_dim), lambda i: (0, 0)),          # b1
            ],
            out_specs=pl.BlockSpec((tb, emb_dim), lambda i: (i, 0)),
            compiler_params=cparams,
            cost_estimate=cost,
        )(t_col, e_col, centers.reshape(1, n_bins),
          params["w0"], params["w1"],
          params["b0"].reshape(1, emb_dim), params["b1"].reshape(1, emb_dim))
        return out[:B, None, :]

    # ------ lane-major (transposed) path for small emb_dim (unmasked stores).
    t_row = jnp.pad(time, (0, pad)).reshape(1, b_pad)
    e_row = jnp.pad(event, (0, pad)).reshape(1, b_pad)
    out_t = pl.pallas_call(
        partial(_kernel_lane_major, inv_std),
        out_shape=jax.ShapeDtypeStruct((emb_dim, b_pad), jnp.float32),
        grid=grid,
        in_specs=[
            pl.BlockSpec((1, tb), lambda i: (0, i)),                   # time
            pl.BlockSpec((1, tb), lambda i: (0, i)),                   # event
            pl.BlockSpec((n_bins, 1), lambda i: (0, 0)),               # centers
            pl.BlockSpec((emb_dim, n_bins), lambda i: (0, 0)),         # w0^T
            pl.BlockSpec((emb_dim, n_bins), lambda i: (0, 0)),         # w1^T
            pl.BlockSpec((emb_dim, 1), lambda i: (0, 0)),              # b0
            pl.BlockSpec((emb_dim, 1), lambda i: (0, 0)),              # b1
        ],
        out_specs=pl.BlockSpec((emb_dim, tb), lambda i: (0, i)),
        compiler_params=cparams,
        cost_estimate=cost,
    )(t_row, e_row, centers.reshape(n_bins, 1),
      params["w0"].T, params["w1"].T,
      params["b0"].reshape(emb_dim, 1), params["b1"].reshape(emb_dim, 1))
    # TODO(synk): downstream consumers should take the (emb_dim, B) layout
    # directly (or fuse this op) to avoid the transpose pass below.
    return out_t[:, :B].T[:, None, :]


# ----------------------------------------------------------------------------
# Params / reference
# ----------------------------------------------------------------------------
def init_params(key, n_bins, emb_dim):
    """Torch Linear weight is (emb_dim, n_bins); we store its transpose
    (n_bins, emb_dim) so `enc @ W` matches torch's `x @ W.T`."""
    k0, k1, k2, k3 = jax.random.split(key, 4)
    bound = 1.0 / (n_bins ** 0.5)
    return {
        "w0": jax.random.uniform(k0, (n_bins, emb_dim), jnp.float32, -bound, bound),
        "b0": jax.random.uniform(k1, (1, emb_dim), jnp.float32, -bound, bound),
        "w1": jax.random.uniform(k2, (n_bins, emb_dim), jnp.float32, -bound, bound),
        "b1": jax.random.uniform(k3, (1, emb_dim), jnp.float32, -bound, bound),
    }


def _reference(time, event, params, *, v_min, v_max, n_bins):
    """Pure-JAX reference mirroring the PyTorch forward."""
    t = jnp.squeeze(time, axis=1)
    e = jnp.squeeze(event, axis=1)
    centers = jnp.linspace(v_min, v_max, n_bins, dtype=jnp.float32)
    rbf_std = (v_max - v_min) / n_bins
    z = (t[:, None] - centers[None, :]) / rbf_std
    enc = jnp.exp(-z ** 2)
    y0 = enc @ params["w0"] + params["b0"]
    y1 = enc @ params["w1"] + params["b1"]
    mask = (e != 0)[:, None]
    return jnp.where(mask, y1, y0)[:, None, :]


# ----------------------------------------------------------------------------
# Smoke test
# ----------------------------------------------------------------------------
if __name__ == "__main__":
    V_MIN, V_MAX, N_BINS = 0.0, 4.0, 16
    key = jax.random.PRNGKey(0)

    # case 1: small emb_dim (lane-major path), tiny batch
    # case 2: emb_dim multiple of 128 (batch-major path, no wrapper transpose)
    # case 3: batch large enough for a multi-step (2-tile) grid + tail padding
    cases = [(8, 32), (8, 128), (300, 32)]

    ok = True
    for i, (B, emb_dim) in enumerate(cases):
        k_p, k_t, k_e = jax.random.split(jax.random.fold_in(key, i), 3)
        params = init_params(k_p, N_BINS, emb_dim)
        time = jax.random.uniform(k_t, (B, 1), jnp.float32, V_MIN, V_MAX)
        event = (jax.random.uniform(k_e, (B, 1)) > 0.5).astype(jnp.float32)

        out = embed_surv_rbf_2heads(time, event, params,
                                    v_min=V_MIN, v_max=V_MAX, n_bins=N_BINS)
        out = jax.block_until_ready(out)
        ref = _reference(time, event, params,
                         v_min=V_MIN, v_max=V_MAX, n_bins=N_BINS)

        ok &= (out.shape == (B, 1, emb_dim))
        ok &= bool(jnp.allclose(out, ref, atol=1e-5, rtol=1e-5))

    assert ok
    print("KERNEL_OK")
</pallas_src>

<mosaic_0001>
module attributes {stable_mosaic.version = 11 : i64} {
  func.func @_kernel_lane_major(%arg0: i32, %arg1: memref<1x128xf32, #tpu.memory_space<vmem>>, %arg2: memref<1x128xf32, #tpu.memory_space<vmem>>, %arg3: memref<16x1xf32, #tpu.memory_space<vmem>>, %arg4: memref<32x16xf32, #tpu.memory_space<vmem>>, %arg5: memref<32x16xf32, #tpu.memory_space<vmem>>, %arg6: memref<32x1xf32, #tpu.memory_space<vmem>>, %arg7: memref<32x1xf32, #tpu.memory_space<vmem>>, %arg8: memref<32x128xf32, #tpu.memory_space<vmem>>) attributes {dimension_semantics = [#tpu.dimension_semantics<parallel>], iteration_bounds = array<i64: 1>, scalar_prefetch = 0 : i64, scratch_operands = 0 : i64, tpu.core_type = #tpu.core_type<tc>, window_params = [{transform_indices = @transform_0, window_bounds = array<i64: 1, 128>}, {transform_indices = @transform_1, window_bounds = array<i64: 1, 128>}, {pipeline_mode = #tpu.pipeline_mode<synchronous>, transform_indices = @transform_2, window_bounds = array<i64: 16, 1>}, {pipeline_mode = #tpu.pipeline_mode<synchronous>, transform_indices = @transform_3, window_bounds = array<i64: 32, 16>}, {pipeline_mode = #tpu.pipeline_mode<synchronous>, transform_indices = @transform_4, window_bounds = array<i64: 32, 16>}, {pipeline_mode = #tpu.pipeline_mode<synchronous>, transform_indices = @transform_5, window_bounds = array<i64: 32, 1>}, {pipeline_mode = #tpu.pipeline_mode<synchronous>, transform_indices = @transform_6, window_bounds = array<i64: 32, 1>}, {transform_indices = @transform_7, window_bounds = array<i64: 32, 128>}]} {
    %c0 = arith.constant 0 : index
    %c0_0 = arith.constant 0 : index
    %0 = vector.load %arg1[%c0, %c0_0] : memref<1x128xf32, #tpu.memory_space<vmem>>, vector<1x128xf32>
    %c0_1 = arith.constant 0 : index
    %c0_2 = arith.constant 0 : index
    %1 = vector.load %arg2[%c0_1, %c0_2] : memref<1x128xf32, #tpu.memory_space<vmem>>, vector<1x128xf32>
    %cst = arith.constant 0.000000e+00 : f32
    %2 = vector.broadcast %cst : f32 to vector<1x128xf32>
    %3 = arith.cmpf one, %1, %2 : vector<1x128xf32>
    %cst_3 = arith.constant 4.000000e+00 : f32
    %4 = vector.broadcast %cst_3 : f32 to vector<1x128xf32>
    %5 = arith.mulf %0, %4 : vector<1x128xf32>
    %c0_4 = arith.constant 0 : index
    %c0_5 = arith.constant 0 : index
    %6 = vector.load %arg3[%c0_4, %c0_5] : memref<16x1xf32, #tpu.memory_space<vmem>>, vector<16x1xf32>
    %7 = vector.broadcast %5 : vector<1x128xf32> to vector<16x128xf32>
    %8 = vector.broadcast %6 : vector<16x1xf32> to vector<16x128xf32>
    %9 = arith.subf %7, %8 : vector<16x128xf32>
    %10 = arith.mulf %9, %9 : vector<16x128xf32>
    %cst_6 = arith.constant 0.000000e+00 : f32
    %11 = vector.broadcast %cst_6 : f32 to vector<16x128xf32>
    %12 = arith.subf %11, %10 : vector<16x128xf32>
    %13 = math.exp %12 : vector<16x128xf32>
    %c0_7 = arith.constant 0 : index
    %c0_8 = arith.constant 0 : index
    %14 = vector.load %arg4[%c0_7, %c0_8] : memref<32x16xf32, #tpu.memory_space<vmem>>, vector<32x16xf32>
    %cst_9 = arith.constant dense<0.000000e+00> : vector<32x128xf32>
    %15 = tpu.matmul %14, %13, %cst_9 {dimension_numbers = #tpu.dot_dimension_numbers<[1], [0], [0], [1], [0, 0, 1, 1], [], []>} : vector<32x16xf32>, vector<16x128xf32>, vector<32x128xf32> -> vector<32x128xf32>
    %c0_10 = arith.constant 0 : index
    %c0_11 = arith.constant 0 : index
    %16 = vector.load %arg5[%c0_10, %c0_11] : memref<32x16xf32, #tpu.memory_space<vmem>>, vector<32x16xf32>
    %cst_12 = arith.constant dense<0.000000e+00> : vector<32x128xf32>
    %17 = tpu.matmul %16, %13, %cst_12 {dimension_numbers = #tpu.dot_dimension_numbers<[1], [0], [0], [1], [0, 0, 1, 1], [], []>} : vector<32x16xf32>, vector<16x128xf32>, vector<32x128xf32> -> vector<32x128xf32>
    %c0_13 = arith.constant 0 : index
    %c0_14 = arith.constant 0 : index
    %18 = vector.load %arg7[%c0_13, %c0_14] : memref<32x1xf32, #tpu.memory_space<vmem>>, vector<32x1xf32>
    %19 = vector.broadcast %18 : vector<32x1xf32> to vector<32x128xf32>
    %20 = arith.addf %17, %19 : vector<32x128xf32>
    %c0_15 = arith.constant 0 : index
    %c0_16 = arith.constant 0 : index
    %21 = vector.load %arg6[%c0_15, %c0_16] : memref<32x1xf32, #tpu.memory_space<vmem>>, vector<32x1xf32>
    %22 = vector.broadcast %21 : vector<32x1xf32> to vector<32x128xf32>
    %23 = arith.addf %15, %22 : vector<32x128xf32>
    %24 = vector.shape_cast %3 : vector<1x128xi1> to vector<1x128xi1>
    %25 = vector.broadcast %24 : vector<1x128xi1> to vector<32x128xi1>
    %26 = arith.select %25, %20, %23 : vector<32x128xi1>, vector<32x128xf32>
    %c0_17 = arith.constant 0 : index
    %c0_18 = arith.constant 0 : index
    %27 = vector.load %arg8[%c0_17, %c0_18] : memref<32x128xf32, #tpu.memory_space<vmem>>, vector<32x128xf32>
    tpu.vector_store %arg8[%c0_17, %c0_18], %26 {strides = array<i32>} : memref<32x128xf32, #tpu.memory_space<vmem>>, vector<32x128xf32>,
    return
  }
  func.func @transform_0(%arg0: i32) -> (i32, i32) {
    %c0_i32 = arith.constant 0 : i32
    %c0_i32_0 = arith.constant 0 : i32
    return %c0_i32, %arg0 : i32, i32
  }
  func.func @transform_1(%arg0: i32) -> (i32, i32) {
    %c0_i32 = arith.constant 0 : i32
    %c0_i32_0 = arith.constant 0 : i32
    return %c0_i32, %arg0 : i32, i32
  }
  func.func @transform_2(%arg0: i32) -> (i32, i32) {
    %c0_i32 = arith.constant 0 : i32
    %c0_i32_0 = arith.constant 0 : i32
    %c0_i32_1 = arith.constant 0 : i32
    return %c0_i32, %c0_i32_0 : i32, i32
  }
  func.func @transform_3(%arg0: i32) -> (i32, i32) {
    %c0_i32 = arith.constant 0 : i32
    %c0_i32_0 = arith.constant 0 : i32
    %c0_i32_1 = arith.constant 0 : i32
    return %c0_i32, %c0_i32_0 : i32, i32
  }
  func.func @transform_4(%arg0: i32) -> (i32, i32) {
    %c0_i32 = arith.constant 0 : i32
    %c0_i32_0 = arith.constant 0 : i32
    %c0_i32_1 = arith.constant 0 : i32
    return %c0_i32, %c0_i32_0 : i32, i32
  }
  func.func @transform_5(%arg0: i32) -> (i32, i32) {
    %c0_i32 = arith.constant 0 : i32
    %c0_i32_0 = arith.constant 0 : i32
    %c0_i32_1 = arith.constant 0 : i32
    return %c0_i32, %c0_i32_0 : i32, i32
  }
  func.func @transform_6(%arg0: i32) -> (i32, i32) {
    %c0_i32 = arith.constant 0 : i32
    %c0_i32_0 = arith.constant 0 : i32
    %c0_i32_1 = arith.constant 0 : i32
    return %c0_i32, %c0_i32_0 : i32, i32
  }
  func.func @transform_7(%arg0: i32) -> (i32, i32) {
    %c0_i32 = arith.constant 0 : i32
    %c0_i32_0 = arith.constant 0 : i32
    return %c0_i32, %arg0 : i32, i32
  }
}

</mosaic_0001>

<bundles_post_ra>
// kernel: tpu_custom_call.1
= control target key start
LH: loop header
LB: loop body
LE: loop exit
PB: predicated region body
PF: predicated region fallthrough
CT: control target
= control target key end

     0   :  { %v34_v1 = vlaneseq  ;;  %v422_v2 = vmov 0   ;;  %s557_s0 = inlined_call_operand.vmem [shape: f32[1,128], index: 0, kind: input, shape index: {}]   ;;  %s558_s1 = inlined_call_operand.vmem [shape: f32[1,128], index: 1, kind: input, shape index: {}]   ;;  %s559_s2 = inlined_call_operand.vmem [shape: f32[16,1], index: 2, kind: input, shape index: {}]   ;;  %s560_s3 = inlined_call_operand.vmem [shape: f32[32,16], index: 3, kind: input, shape index: {}]   ;;  %s561_s4 = inlined_call_operand.vmem [shape: f32[32,16], index: 4, kind: input, shape index: {}]   ;;  %s562_s5 = inlined_call_operand.vmem [shape: f32[32,1], index: 5, kind: input, shape index: {}]   ;;  %s563_s6 = inlined_call_operand.vmem [shape: f32[32,1], index: 6, kind: input, shape index: {}]   ;;  %s564_s7 = inlined_call_operand.hbm [shape: f32[32,128], index: 7, kind: output, shape index: {}]  }
   0x1   :  { %v31_v0 = vld [vmem:[%s559_s2] sm:$0xff]  ;;  %392 = vset.pattern.permute.xlu0 %v422_v2  ;;  %393 = vset.pattern.permute.xlu1 %v422_v2 }
   0x2   :  { %v28_v3 = vld [vmem:[%s558_s1] sm:$0x1]  ;;  %41 = vperm.xlu0 %392, %v31_v0  }
   0x3   :  { %12 = vsyncpa [#allocation3], 0  ;;  %v32_v4 = vld [vmem:[%s559_s2 + $0x8] sm:$0xff]  ;;  %vm29_vm0 = vcmp.ne.f32.partialorder %v28_v3, 0.0  ;;  %v35_v5 = vshrl.u32 %v34_v1, 7  ;;  %v69_v7 = vld [vmem:[%s563_s6 + $0x10] sm:$0xff] }
   0x4   :  { %v310_v6 = vsel %vm29_vm0, 1, %v422_v2  ;;  %v189_v10 = vld [vmem:[%s562_s5] sm:$0xff]  ;;  %v191_v11 = vld [vmem:[%s562_s5 + $0x10] sm:$0xff]  ;;  %vm91_vm1 = vcmask 130048   ;;  %v68_v15 = vld [vmem:[%s563_s6 + $0x8] sm:$0xff] }
   0x5   :  { %v36_v8 = vsub.s32 0, %v35_v5  ;;  %v63_v12 = vld [vmem:[%s561_s4] sm:$0xff]  ;;  %v70_v16 = vld [vmem:[%s563_s6 + $0x18] sm:$0xff]  ;;  %v190_v17 = vld [vmem:[%s562_s5 + $0x8] sm:$0xff] }
   0x6   :  { %46 = vperm.xlu0 %392, %v32_v4   ;;  %v59_v13 = vld [vmem:[%s560_s3] sm:$0xff]  ;;  %364 = vmatprep.mubr.msk.f32.mxu0 %vm91_vm1, %v63_v12  ;;  %v192_v18 = vld [vmem:[%s562_s5 + $0x18] sm:$0xff]  ;;  %v64_v35 = vld [vmem:[%s561_s4 + $0x8] sm:$0xff] }
   0x7   :  { %v478_v9 = vrot.slane %v310_v6, %v36_v8  ;;  %374 = vmatprep.mubr.msk.f32.mxu1 %vm91_vm1, %v59_v13  ;;  %v67_v14 = vld [vmem:[%s563_s6] sm:$0xff]  ;;  %v60_v36 = vld [vmem:[%s560_s3 + $0x8] sm:$0xff]  ;;  %v65_v37 = vld [vmem:[%s561_s4 + $0x10] sm:$0xff] }
   0x8   :  { %73 = vperm.xlu1 %393, %v67_v14   ;;  %v27_v19 = vld [vmem:[%s557_s0] sm:$0x1]  ;;  %v61_v38 = vld [vmem:[%s560_s3 + $0x10] sm:$0xff]  ;;  %v66_v39 = vld [vmem:[%s561_s4 + $0x18] sm:$0xff] }
   0x9   :  { %v30_v20 = vmul.f32 4.0, %v27_v19  ;;  %v62_v40 = vld [vmem:[%s560_s3 + $0x18] sm:$0xff]  ;;  %vm315_vm2 = vcmp.eq.s32.totalorder %v478_v9, 1  ;;  %s423_s3 = smov [#allocation2]  }
   0xa   :  { %83 = vperm.xlu0 %392, %v69_v7   ;;  %s329_s4 = sshll.u32 %s423_s3, 4  ;;  %s330_s4 = int_to_ptr.vmem [resolvable:$true] %s329_s4 }
   0xb   :  { %v37_v21 = vrot.slane %v30_v20, %v36_v8  ;;  %s398_s2 = scalar_lea.vmem %s330_s4, 512  ;;  %p403_p1 = scmp.lt.s32.totalorder %s330_s4, %s330_s4 }
   0xc   :  { %78 = vperm.xlu1 %393, %v68_v15   ;;  %p399_p0 = scmp.ne.s32.totalorder %s330_s4, %s398_s2  ;;  %p404_p2 = scmp.lt.s32.totalorder %s398_s2, %s398_s2 }
   0xe   :  { %195 = vperm.xlu0 %392, %v189_v10   ;;  %p405_p3 = por %p404_p2, %p403_p1 }
  0x10   :  { %88 = vperm.xlu1 %393, %v70_v16   ;;  %p406_p4 = pnand %p405_p3, %p399_p0 }
  0x12   :  { %205 = vperm.xlu0 %392, %v191_v11  }
  0x14   :  { %200 = vperm.xlu1 %393, %v190_v17  }
  0x18   :  { %210 = vperm.xlu1 %393, %v192_v18  }
  0x81   :  { %v42_v22 = vpop.permute.xlu0 %41 }
  0x82   :  { %v49_v23 = vsub.f32 %v37_v21, %v42_v22 }
  0x84   :  { %v51_v24 = vmul.f32 %v49_v23, %v49_v23 }
  0x85   :  { %v47_v25 = vpop.permute.xlu0 %46 }
  0x86   :  { %v53_v26 = vsub.f32 0.0, %v51_v24  ;;  %v50_v27 = vsub.f32 %v37_v21, %v47_v25 }
  0x87   :  { %v74_v41 = vpop.permute.xlu1 %73 }
  0x88   :  { %v52_v28 = vmul.f32 %v50_v27, %v50_v27  ;;  %v55_v29 = vmul.f32 1.442695, %v53_v26 }
  0x89   :  { %v84_v43 = vpop.permute.xlu0 %83 }
  0x8a   :  { %v54_v30 = vsub.f32 0.0, %v52_v28  ;;  %394 = vpow2.f32 %v55_v29 }
  0x8b   :  { %v79_v42 = vpop.permute.xlu1 %78 }
  0x8c   :  { %v57_v31 = vmul.f32 1.442695, %v54_v30 }
  0x8d   :  { %v196_v45 = vpop.permute.xlu0 %195 }
  0x8e   :  { %396 = vpow2.f32 %v57_v31 }
  0x8f   :  { %v89_v44 = vpop.permute.xlu1 %88 }
  0x91   :  { %v206_v55 = vpop.permute.xlu0 %205 }
  0x93   :  { %v201_v46 = vpop.permute.xlu1 %200 }
  0x94   :  { %v395_v32 = vpop.eup %394 }
  0x97   :  { %v211_v56 = vpop.permute.xlu1 %210 }
  0x98   :  { %v397_v33 = vpop.eup %396 }
  0x99   :  { %v380_v34 = vpack.c.bf16 %v397_v33, %v395_v32 }
  0x9b   :  { %381 = vmatprep.subr.bf16.mxu0 %v380_v34  ;;  %385 = vmatprep.subr.bf16.mxu1 %v380_v34 }
  0x9c   :  { %383 = vmatpush3.bf16.msra.mxu0 %v380_v34  ;;  %387 = vmatpush3.bf16.msra.mxu1 %v380_v34 }
  0x9f   :  { %365 = vmatmul.mubr.msk.f32.vlgmr.msra.gmra.mrb[0].mxu0 %vm91_vm1, %v64_v35  ;;  %375 = vmatmul.mubr.msk.f32.vlgmr.msra.gmra.mrb[0].mxu1 %vm91_vm1, %v60_v36 }
  0xa0   :  { %367 = vmatprep.mubr.msk.f32.mxu0 %vm91_vm1, %v65_v37  ;;  %377 = vmatprep.mubr.msk.f32.mxu1 %vm91_vm1, %v61_v38 }
  0xa3   :  { %368 = vmatmul.mubr.msk.f32.gmra.mrb[2].mxu0 %vm91_vm1, %v66_v39  ;;  %378 = vmatmul.mubr.msk.f32.gmra.mrb[2].mxu1 %vm91_vm1, %v62_v40 }
 0x172   :  { %v366_v47 = vpop.f32.mrb[0].mxu0  ;;  %v376_v48 = vpop.f32.mrb[0].mxu1 }
 0x173   :  { %v176_v49 = vadd.f32 %v366_v47, %v79_v42  ;;  %v297_v50 = vadd.f32 %v376_v48, %v201_v46  ;;  %v170_v51 = vpop.f32.mrb[1].mxu0  ;;  %v291_v52 = vpop.f32.mrb[1].mxu1 }
 0x174   :  { %v171_v53 = vadd.f32 %v170_v51, %v74_v41  ;;  %v292_v54 = vadd.f32 %v291_v52, %v196_v45 }
 0x175   :  { %v317_v57 = vsel %vm315_vm2, %v176_v49, %v297_v50 }
 0x176   :  { %321 = vst [vmem:[#allocation2 + $0x8] sm:$0xff] %v317_v57  ;;  %v316_v58 = vsel %vm315_vm2, %v171_v53, %v292_v54  ;;  %v369_v59 = vpop.f32.mrb[2].mxu0  ;;  %v379_v60 = vpop.f32.mrb[2].mxu1 }
 0x177   :  { %320 = vst [vmem:[#allocation2] sm:$0xff] %v316_v58  ;;  %v186_v61 = vadd.f32 %v369_v59, %v89_v44  ;;  %v307_v62 = vadd.f32 %v379_v60, %v211_v56  ;;  %v180_v63 = vpop.f32.mrb[3].mxu0  ;;  %v301_v0 = vpop.f32.mrb[3].mxu1 }
 0x178   :  { %v181_v1 = vadd.f32 %v180_v63, %v84_v43  ;;  %v302_v2 = vadd.f32 %v301_v0, %v206_v55 }
 0x179   :  { %v319_v3 = vsel %vm315_vm2, %v186_v61, %v307_v62 }
 0x17a   :  { %323 = vst [vmem:[#allocation2 + $0x18] sm:$0xff] %v319_v3  ;;  %v318_v4 = vsel %vm315_vm2, %v181_v1, %v302_v2 }
 0x17b   :  { %322 = vst [vmem:[#allocation2 + $0x10] sm:$0xff] %v318_v4 }
 0x17c   :  { %409 = shalt.err (!%p406_p4)
}
 0x17d   :  { %s410_s14 = scalar_lea.hbm %s564_s7, 512 }
 0x17e   :  { %p411_p5 = scmp.ne.s32.totalorder %s564_s7, %s410_s14  ;;  %p414_p6 = scmp.lt.u32.totalorder %s410_s14, %s564_s7 }
 0x180   :  { %p416_p7 = pnand %p414_p6, %p411_p5 }
 0x182   :  { %419 = shalt.err (!%p416_p7)
}
 0x183   :  { %s424_s19 = smov 128   ;;  %s425_s20 = smov 8  }
 0x184   :  { %335 = dma.vmem_to_hbm [thread:$0]  %s330_s4, 512, %s564_s7, [#allocation3], %s424_s19, %s424_s19, %s425_s20  }
 0x185   :  { %420 = dma.done.wait [#allocation3], 512  }
 0x186   :  { %421 = vsyncadd [#allocation3], 4294966784 }
 0x187   :  { %339 = vsyncpa [#allocation3], 1 }

</bundles_post_ra>
